<compile_context>
chip_gen: v7x
topology: tpu7x:2x2x1
jax: 0.10.0
libtpu: 0.0.40
codegen_flags: <defaults>
</compile_context>

<pallas_src>
import functools

import jax
import jax.numpy as jnp
from jax.experimental import pallas as pl
from jax.experimental.pallas import tpu as pltpu

_LANE = 128  # lane-dense padded channel width


def _fused_cnn_kernel(x_ref, w1_ref, b1_ref, w2_ref, b2_ref, w3_ref, b3_ref,
                      o_ref, act_a, act_b, *, window, pad, seq_len):
    """Fused 3x (Conv1d 'same' + ReLU) for one batch element.

    x_ref : (L, 128)       bf16 channel-padded input (channels-last)
    w*_ref: (W*128, 128)   bf16 im2col-flattened weights (tap-major rows)
    b*_ref: (1, 128)       f32  channel-padded bias
    o_ref : (L, 128)       f32  channel-padded output
    act_a, act_b : (L + 2*pad, 128) f32 VMEM scratch slabs (zero halos).
    """

    def conv_relu(act_ref, w_ref, b_ref):
        # im2col: lane-dim concat of W shifted (L, 128) views -> (L, W*128),
        # then a single MXU push with K = W*128 (bf16 in, f32 accumulate).
        x_win = jnp.concatenate(
            [act_ref[pl.ds(t, seq_len), :] for t in range(window)], axis=1
        ).astype(jnp.bfloat16)
        acc = jnp.dot(x_win, w_ref[...], preferred_element_type=jnp.float32)
        return jnp.maximum(acc + b_ref[...], 0.0)            # (L, 128) f32

    # Zero both padded slabs; only interiors are written afterwards, so the
    # halo rows provide the 'same' padding for every layer.
    act_a[...] = jnp.zeros_like(act_a)
    act_b[...] = jnp.zeros_like(act_b)

    # Layer 1: input -> act_a interior.
    act_a[pl.ds(pad, seq_len), :] = x_ref[...].astype(jnp.float32)
    h1 = conv_relu(act_a, w1_ref, b1_ref)

    # Layer 2: h1 stays in VMEM (act_b interior).
    act_b[pl.ds(pad, seq_len), :] = h1
    h2 = conv_relu(act_b, w2_ref, b2_ref)

    # Layer 3: h2 -> act_a interior (halo already zero) -> lane-dense output.
    act_a[pl.ds(pad, seq_len), :] = h2
    h3 = conv_relu(act_a, w3_ref, b3_ref)

    o_ref[...] = h3.astype(o_ref.dtype)


def cnn_forward_pallas(x, params):
    """x: (B, L, input_dim) f32; params: 3x (w (W, Cin, Cout) f32, b (Cout,) f32)."""
    B, L, cin0 = x.shape
    window = params[0][0].shape[0]
    # TODO(synk): even window_size needs PyTorch's Lout = L-1 conv shape with
    # pad=(W-1)//2; only odd kernels (module default W=3) are implemented.
    assert window % 2 == 1, "only odd window_size supported"
    pad = (window - 1) // 2
    lp = L + 2 * pad
    cout_final = params[-1][0].shape[2]

    def prep_w(w):
        wk, ci, co = w.shape
        wp = jnp.zeros((wk, _LANE, _LANE), jnp.bfloat16)
        wp = wp.at[:, :ci, :co].set(w.astype(jnp.bfloat16))
        return wp.reshape(wk * _LANE, _LANE)          # tap-major im2col layout

    def prep_b(b):
        return (jnp.zeros((1, _LANE), jnp.float32)
                .at[0, :b.shape[0]].set(b.astype(jnp.float32)))

    (w1, b1), (w2, b2), (w3, b3) = params
    x_pad = (jnp.zeros((B, L, _LANE), jnp.bfloat16)
             .at[:, :, :cin0].set(x.astype(jnp.bfloat16)))

    kernel = functools.partial(_fused_cnn_kernel, window=window, pad=pad,
                               seq_len=L)
    act_spec = pl.BlockSpec((None, L, _LANE), lambda b: (b, 0, 0))
    w_spec = pl.BlockSpec((window * _LANE, _LANE), lambda b: (0, 0))
    b_spec = pl.BlockSpec((1, _LANE), lambda b: (0, 0))

    out = pl.pallas_call(
        kernel,
        out_shape=jax.ShapeDtypeStruct((B, L, _LANE), jnp.float32),
        grid=(B,),
        in_specs=[act_spec, w_spec, b_spec, w_spec, b_spec, w_spec, b_spec],
        out_specs=act_spec,
        scratch_shapes=[
            pltpu.VMEM((lp, _LANE), jnp.float32),
            pltpu.VMEM((lp, _LANE), jnp.float32),
        ],
        compiler_params=pltpu.CompilerParams(
            dimension_semantics=("parallel",)),
    )(x_pad, prep_w(w1), prep_b(b1), prep_w(w2), prep_b(b2),
      prep_w(w3), prep_b(b3))

    return out[:, :, :cout_final]


cnn_forward = jax.jit(cnn_forward_pallas)


def init_cnn_params(key, input_dim, hidden_dim1, hidden_dim2, output_dim,
                    window_size):
    """Deterministic PyTorch-style uniform init; weights stored (W, Cin, Cout)."""
    dims = [(input_dim, hidden_dim1), (hidden_dim1, hidden_dim2),
            (hidden_dim2, output_dim)]
    params = []
    for cin, cout in dims:
        key, kw, kb = jax.random.split(key, 3)
        bound = 1.0 / jnp.sqrt(jnp.float32(cin * window_size))
        w = jax.random.uniform(kw, (window_size, cin, cout), jnp.float32,
                               -bound, bound)
        b = jax.random.uniform(kb, (cout,), jnp.float32, -bound, bound)
        params.append((w, b))
    return params


def _reference_forward(x, params):
    """Pure-JAX reference using the same bf16-operand / f32-accumulate math."""
    out = x.astype(jnp.float32)
    for w, b in params:
        wk, _, co = w.shape
        pad = (wk - 1) // 2
        L = out.shape[1]
        xp = jnp.pad(out.astype(jnp.bfloat16), ((0, 0), (pad, pad), (0, 0)))
        acc = jnp.zeros((out.shape[0], L, co), jnp.float32)
        for t in range(wk):
            acc = acc + jnp.einsum(
                "bli,io->blo", xp[:, t:t + L, :], w[t].astype(jnp.bfloat16),
                preferred_element_type=jnp.float32)
        out = jnp.maximum(acc + b[None, None, :], 0.0)
    return out


if __name__ == "__main__":
    # Shapes consistent with the module's forward:
    #   input: (batch=2, seq=16, input_dim=8)
    #   hidden_dim1=32, hidden_dim2=32, output_dim=16, window_size=3
    B, L = 2, 16
    input_dim, hidden_dim1, hidden_dim2, output_dim, window_size = 8, 32, 32, 16, 3

    key = jax.random.PRNGKey(0)
    key, kx = jax.random.split(key)
    x = jax.random.normal(kx, (B, L, input_dim), jnp.float32)

    params = init_cnn_params(key, input_dim, hidden_dim1, hidden_dim2,
                             output_dim, window_size)

    out = cnn_forward(x, params)
    out = jax.block_until_ready(out)
    assert out.shape == (B, L, output_dim), out.shape

    ref = _reference_forward(x, params)
    max_err = float(jnp.max(jnp.abs(out - ref)))
    assert jnp.allclose(out, ref, atol=2e-3, rtol=2e-3), max_err

    print("KERNEL_OK")
</pallas_src>

<mosaic_0001>
module attributes {stable_mosaic.version = 11 : i64} {
  func.func @_fused_cnn_kernel(%arg0: i32, %arg1: memref<1x16x128xbf16, #tpu.memory_space<vmem>>, %arg2: memref<384x128xbf16, #tpu.memory_space<vmem>>, %arg3: memref<1x128xf32, #tpu.memory_space<vmem>>, %arg4: memref<384x128xbf16, #tpu.memory_space<vmem>>, %arg5: memref<1x128xf32, #tpu.memory_space<vmem>>, %arg6: memref<384x128xbf16, #tpu.memory_space<vmem>>, %arg7: memref<1x128xf32, #tpu.memory_space<vmem>>, %arg8: memref<1x16x128xf32, #tpu.memory_space<vmem>>, %arg9: memref<18x128xf32, #tpu.memory_space<vmem>>, %arg10: memref<18x128xf32, #tpu.memory_space<vmem>>) attributes {dimension_semantics = [#tpu.dimension_semantics<parallel>], iteration_bounds = array<i64: 2>, scalar_prefetch = 0 : i64, scratch_operands = 2 : i64, tpu.core_type = #tpu.core_type<tc>, window_params = [{transform_indices = @transform_0, window_bounds = array<i64: 1, 16, 128>}, {pipeline_mode = #tpu.pipeline_mode<synchronous>, transform_indices = @transform_1, window_bounds = array<i64: 384, 128>}, {pipeline_mode = #tpu.pipeline_mode<synchronous>, transform_indices = @transform_2, window_bounds = array<i64: 1, 128>}, {pipeline_mode = #tpu.pipeline_mode<synchronous>, transform_indices = @transform_3, window_bounds = array<i64: 384, 128>}, {pipeline_mode = #tpu.pipeline_mode<synchronous>, transform_indices = @transform_4, window_bounds = array<i64: 1, 128>}, {pipeline_mode = #tpu.pipeline_mode<synchronous>, transform_indices = @transform_5, window_bounds = array<i64: 384, 128>}, {pipeline_mode = #tpu.pipeline_mode<synchronous>, transform_indices = @transform_6, window_bounds = array<i64: 1, 128>}, {transform_indices = @transform_7, window_bounds = array<i64: 1, 16, 128>}]} {
    %cst = arith.constant 0.000000e+00 : f32
    %0 = vector.broadcast %cst : f32 to vector<18x128xf32>
    %c0 = arith.constant 0 : index
    %c0_0 = arith.constant 0 : index
    %1 = vector.load %arg9[%c0, %c0_0] : memref<18x128xf32, #tpu.memory_space<vmem>>, vector<18x128xf32>
    tpu.vector_store %arg9[%c0, %c0_0], %0 {strides = array<i32>} : memref<18x128xf32, #tpu.memory_space<vmem>>, vector<18x128xf32>,
    %cst_1 = arith.constant 0.000000e+00 : f32
    %2 = vector.broadcast %cst_1 : f32 to vector<18x128xf32>
    %c0_2 = arith.constant 0 : index
    %c0_3 = arith.constant 0 : index
    %3 = vector.load %arg10[%c0_2, %c0_3] : memref<18x128xf32, #tpu.memory_space<vmem>>, vector<18x128xf32>
    tpu.vector_store %arg10[%c0_2, %c0_3], %2 {strides = array<i32>} : memref<18x128xf32, #tpu.memory_space<vmem>>, vector<18x128xf32>,
    %c0_4 = arith.constant 0 : index
    %c0_5 = arith.constant 0 : index
    %c0_6 = arith.constant 0 : index
    %4 = vector.load %arg1[%c0_4, %c0_5, %c0_6] : memref<1x16x128xbf16, #tpu.memory_space<vmem>>, vector<1x16x128xbf16>
    %5 = vector.shape_cast %4 : vector<1x16x128xbf16> to vector<16x128xbf16>
    %6 = arith.extf %5 : vector<16x128xbf16> to vector<16x128xf32>
    %c1 = arith.constant 1 : index
    %c0_7 = arith.constant 0 : index
    %7 = vector.load %arg9[%c1, %c0_7] : memref<18x128xf32, #tpu.memory_space<vmem>>, vector<16x128xf32>
    tpu.vector_store %arg9[%c1, %c0_7], %6 {strides = array<i32>} : memref<18x128xf32, #tpu.memory_space<vmem>>, vector<16x128xf32>,
    %c0_8 = arith.constant 0 : index
    %c0_9 = arith.constant 0 : index
    %8 = vector.load %arg9[%c0_8, %c0_9] : memref<18x128xf32, #tpu.memory_space<vmem>>, vector<16x128xf32>
    %c1_10 = arith.constant 1 : index
    %c0_11 = arith.constant 0 : index
    %9 = vector.load %arg9[%c1_10, %c0_11] : memref<18x128xf32, #tpu.memory_space<vmem>>, vector<16x128xf32>
    %c2 = arith.constant 2 : index
    %c0_12 = arith.constant 0 : index
    %10 = vector.load %arg9[%c2, %c0_12] : memref<18x128xf32, #tpu.memory_space<vmem>>, vector<16x128xf32>
    %11 = tpu.concatenate %8, %9, %10 in 1 : vector<16x128xf32>, vector<16x128xf32>, vector<16x128xf32> -> vector<16x384xf32>
    %12 = arith.truncf %11 : vector<16x384xf32> to vector<16x384xbf16>
    %c0_13 = arith.constant 0 : index
    %c0_14 = arith.constant 0 : index
    %13 = vector.load %arg2[%c0_13, %c0_14] : memref<384x128xbf16, #tpu.memory_space<vmem>>, vector<384x128xbf16>
    %cst_15 = arith.constant dense<0.000000e+00> : vector<16x128xf32>
    %14 = tpu.matmul %12, %13, %cst_15 {dimension_numbers = #tpu.dot_dimension_numbers<[1], [0], [0], [1], [0, 0, 1, 1], [], []>} : vector<16x384xbf16>, vector<384x128xbf16>, vector<16x128xf32> -> vector<16x128xf32>
    %c0_16 = arith.constant 0 : index
    %c0_17 = arith.constant 0 : index
    %15 = vector.load %arg3[%c0_16, %c0_17] : memref<1x128xf32, #tpu.memory_space<vmem>>, vector<1x128xf32>
    %16 = vector.broadcast %15 : vector<1x128xf32> to vector<16x128xf32>
    %17 = arith.addf %14, %16 : vector<16x128xf32>
    %cst_18 = arith.constant 0.000000e+00 : f32
    %18 = vector.broadcast %cst_18 : f32 to vector<16x128xf32>
    %19 = arith.maximumf %17, %18 : vector<16x128xf32>
    %c1_19 = arith.constant 1 : index
    %c0_20 = arith.constant 0 : index
    %20 = vector.load %arg10[%c1_19, %c0_20] : memref<18x128xf32, #tpu.memory_space<vmem>>, vector<16x128xf32>
    tpu.vector_store %arg10[%c1_19, %c0_20], %19 {strides = array<i32>} : memref<18x128xf32, #tpu.memory_space<vmem>>, vector<16x128xf32>,
    %c0_21 = arith.constant 0 : index
    %c0_22 = arith.constant 0 : index
    %21 = vector.load %arg10[%c0_21, %c0_22] : memref<18x128xf32, #tpu.memory_space<vmem>>, vector<16x128xf32>
    %c1_23 = arith.constant 1 : index
    %c0_24 = arith.constant 0 : index
    %22 = vector.load %arg10[%c1_23, %c0_24] : memref<18x128xf32, #tpu.memory_space<vmem>>, vector<16x128xf32>
    %c2_25 = arith.constant 2 : index
    %c0_26 = arith.constant 0 : index
    %23 = vector.load %arg10[%c2_25, %c0_26] : memref<18x128xf32, #tpu.memory_space<vmem>>, vector<16x128xf32>
    %24 = tpu.concatenate %21, %22, %23 in 1 : vector<16x128xf32>, vector<16x128xf32>, vector<16x128xf32> -> vector<16x384xf32>
    %25 = arith.truncf %24 : vector<16x384xf32> to vector<16x384xbf16>
    %c0_27 = arith.constant 0 : index
    %c0_28 = arith.constant 0 : index
    %26 = vector.load %arg4[%c0_27, %c0_28] : memref<384x128xbf16, #tpu.memory_space<vmem>>, vector<384x128xbf16>
    %cst_29 = arith.constant dense<0.000000e+00> : vector<16x128xf32>
    %27 = tpu.matmul %25, %26, %cst_29 {dimension_numbers = #tpu.dot_dimension_numbers<[1], [0], [0], [1], [0, 0, 1, 1], [], []>} : vector<16x384xbf16>, vector<384x128xbf16>, vector<16x128xf32> -> vector<16x128xf32>
    %c0_30 = arith.constant 0 : index
    %c0_31 = arith.constant 0 : index
    %28 = vector.load %arg5[%c0_30, %c0_31] : memref<1x128xf32, #tpu.memory_space<vmem>>, vector<1x128xf32>
    %29 = vector.broadcast %28 : vector<1x128xf32> to vector<16x128xf32>
    %30 = arith.addf %27, %29 : vector<16x128xf32>
    %cst_32 = arith.constant 0.000000e+00 : f32
    %31 = vector.broadcast %cst_32 : f32 to vector<16x128xf32>
    %32 = arith.maximumf %30, %31 : vector<16x128xf32>
    %c1_33 = arith.constant 1 : index
    %c0_34 = arith.constant 0 : index
    %33 = vector.load %arg9[%c1_33, %c0_34] : memref<18x128xf32, #tpu.memory_space<vmem>>, vector<16x128xf32>
    tpu.vector_store %arg9[%c1_33, %c0_34], %32 {strides = array<i32>} : memref<18x128xf32, #tpu.memory_space<vmem>>, vector<16x128xf32>,
    %c0_35 = arith.constant 0 : index
    %c0_36 = arith.constant 0 : index
    %34 = vector.load %arg9[%c0_35, %c0_36] : memref<18x128xf32, #tpu.memory_space<vmem>>, vector<16x128xf32>
    %c1_37 = arith.constant 1 : index
    %c0_38 = arith.constant 0 : index
    %35 = vector.load %arg9[%c1_37, %c0_38] : memref<18x128xf32, #tpu.memory_space<vmem>>, vector<16x128xf32>
    %c2_39 = arith.constant 2 : index
    %c0_40 = arith.constant 0 : index
    %36 = vector.load %arg9[%c2_39, %c0_40] : memref<18x128xf32, #tpu.memory_space<vmem>>, vector<16x128xf32>
    %37 = tpu.concatenate %34, %35, %36 in 1 : vector<16x128xf32>, vector<16x128xf32>, vector<16x128xf32> -> vector<16x384xf32>
    %38 = arith.truncf %37 : vector<16x384xf32> to vector<16x384xbf16>
    %c0_41 = arith.constant 0 : index
    %c0_42 = arith.constant 0 : index
    %39 = vector.load %arg6[%c0_41, %c0_42] : memref<384x128xbf16, #tpu.memory_space<vmem>>, vector<384x128xbf16>
    %cst_43 = arith.constant dense<0.000000e+00> : vector<16x128xf32>
    %40 = tpu.matmul %38, %39, %cst_43 {dimension_numbers = #tpu.dot_dimension_numbers<[1], [0], [0], [1], [0, 0, 1, 1], [], []>} : vector<16x384xbf16>, vector<384x128xbf16>, vector<16x128xf32> -> vector<16x128xf32>
    %c0_44 = arith.constant 0 : index
    %c0_45 = arith.constant 0 : index
    %41 = vector.load %arg7[%c0_44, %c0_45] : memref<1x128xf32, #tpu.memory_space<vmem>>, vector<1x128xf32>
    %42 = vector.broadcast %41 : vector<1x128xf32> to vector<16x128xf32>
    %43 = arith.addf %40, %42 : vector<16x128xf32>
    %cst_46 = arith.constant 0.000000e+00 : f32
    %44 = vector.broadcast %cst_46 : f32 to vector<16x128xf32>
    %45 = arith.maximumf %43, %44 : vector<16x128xf32>
    %c0_47 = arith.constant 0 : index
    %c0_48 = arith.constant 0 : index
    %c0_49 = arith.constant 0 : index
    %46 = vector.load %arg8[%c0_47, %c0_48, %c0_49] : memref<1x16x128xf32, #tpu.memory_space<vmem>>, vector<1x16x128xf32>
    %47 = vector.shape_cast %46 : vector<1x16x128xf32> to vector<16x128xf32>
    %48 = vector.shape_cast %45 : vector<16x128xf32> to vector<1x16x128xf32>
    tpu.vector_store %arg8[%c0_47, %c0_48, %c0_49], %48 {strides = array<i32>} : memref<1x16x128xf32, #tpu.memory_space<vmem>>, vector<1x16x128xf32>,
    return
  }
  func.func @transform_0(%arg0: i32) -> (i32, i32, i32) {
    %c0_i32 = arith.constant 0 : i32
    %c0_i32_0 = arith.constant 0 : i32
    %c0_i32_1 = arith.constant 0 : i32
    return %arg0, %c0_i32, %c0_i32_0 : i32, i32, i32
  }
  func.func @transform_1(%arg0: i32) -> (i32, i32) {
    %c0_i32 = arith.constant 0 : i32
    %c0_i32_0 = arith.constant 0 : i32
    %c0_i32_1 = arith.constant 0 : i32
    return %c0_i32, %c0_i32_0 : i32, i32
  }
  func.func @transform_2(%arg0: i32) -> (i32, i32) {
    %c0_i32 = arith.constant 0 : i32
    %c0_i32_0 = arith.constant 0 : i32
    %c0_i32_1 = arith.constant 0 : i32
    return %c0_i32, %c0_i32_0 : i32, i32
  }
  func.func @transform_3(%arg0: i32) -> (i32, i32) {
    %c0_i32 = arith.constant 0 : i32
    %c0_i32_0 = arith.constant 0 : i32
    %c0_i32_1 = arith.constant 0 : i32
    return %c0_i32, %c0_i32_0 : i32, i32
  }
  func.func @transform_4(%arg0: i32) -> (i32, i32) {
    %c0_i32 = arith.constant 0 : i32
    %c0_i32_0 = arith.constant 0 : i32
    %c0_i32_1 = arith.constant 0 : i32
    return %c0_i32, %c0_i32_0 : i32, i32
  }
  func.func @transform_5(%arg0: i32) -> (i32, i32) {
    %c0_i32 = arith.constant 0 : i32
    %c0_i32_0 = arith.constant 0 : i32
    %c0_i32_1 = arith.constant 0 : i32
    return %c0_i32, %c0_i32_0 : i32, i32
  }
  func.func @transform_6(%arg0: i32) -> (i32, i32) {
    %c0_i32 = arith.constant 0 : i32
    %c0_i32_0 = arith.constant 0 : i32
    %c0_i32_1 = arith.constant 0 : i32
    return %c0_i32, %c0_i32_0 : i32, i32
  }
  func.func @transform_7(%arg0: i32) -> (i32, i32, i32) {
    %c0_i32 = arith.constant 0 : i32
    %c0_i32_0 = arith.constant 0 : i32
    %c0_i32_1 = arith.constant 0 : i32
    return %arg0, %c0_i32, %c0_i32_0 : i32, i32, i32
  }
}

</mosaic_0001>

<bundles_post_ra>
// kernel: cnn_forward_pallas.1
= control target key start
LH: loop header
LB: loop body
LE: loop exit
PB: predicated region body
PF: predicated region fallthrough
CT: control target
= control target key end

     0   :  { %12 = vsyncpa [#allocation5], 0  ;;  %s2083_s0 = inlined_call_operand.vmem [shape: bf16[2,16,128], index: 0, kind: input, shape index: {}]   ;;  %s2084_s1 = inlined_call_operand.vmem [shape: bf16[384,128], index: 1, kind: input, shape index: {}]   ;;  %s2085_s2 = inlined_call_operand.vmem [shape: f32[1,128], index: 2, kind: input, shape index: {}]   ;;  %s2086_s3 = inlined_call_operand.vmem [shape: bf16[384,128], index: 3, kind: input, shape index: {}]   ;;  %s2087_s4 = inlined_call_operand.vmem [shape: f32[1,128], index: 4, kind: input, shape index: {}]   ;;  %s2088_s5 = inlined_call_operand.vmem [shape: bf16[384,128], index: 5, kind: input, shape index: {}]   ;;  %s2089_s6 = inlined_call_operand.vmem [shape: f32[1,128], index: 6, kind: input, shape index: {}]   ;;  %s2090_s7 = inlined_call_operand.hbm [shape: f32[2,16,128], index: 7, kind: output, shape index: {}]  }
   0x1   :  { %14 = vsyncpa [#allocation5 + $0x1], 0  ;;  %s1719_s24 = smov 0   ;;  %s1721_s25 = smov 0  }
   0x2   :  { %s1723_s26 = smov 0   ;;  %s1725_s27 = smov 0  }
   0x3 LB: > { %s1740_s28 = sadd.s32 4294967295, %s1672_s27   ;;  %s1248_s29 = sadd.s32 4294967294, %s1672_s27   ;;  %s1672_s27 = sphi %s1725_s27, %s2096_s27   ;;  %s1668_s26 = sphi %s1723_s26, %s2095_s26   ;;  %s1664_s25 = sphi %s1721_s25, %s2094_s25   ;;  %s1660_s24 = sphi %s1719_s24, %s2093_s24  }
   0x4   : > { %s1744_s30 = sadd.s32 1, %s1672_s27   ;;  %s179_s8 = sadd.s32 1, %s1668_s26 }
   0x5   : > { %s176_s9 = ssub.s32 %s1672_s27, %s1744_s30  ;;  %p189_p0 = scmp.ne.s32.totalorder %s1668_s26, %s1664_s25 }
   0x6   : > { %p177_p1 = scmp.eq.s32.totalorder %s176_s9, 0  ;;  %p190_p2 = scmp.eq.s32.totalorder %s1740_s28, 1 }
   0x7   : > { %p195_p3 = scmp.ne.s32.totalorder %s1664_s25, %s1660_s24  ;;  %p196_p4 = scmp.eq.s32.totalorder %s1248_s29, 1 }
   0x8   : > { %s1755_s10 = scalar_select %p177_p1, %s1668_s26, %s179_s8  }
   0x9   : > { %p1757_p5 = por %p190_p2, %p189_p0  ;;  %p1761_p6 = por %p196_p4, %p195_p3 }
   0xa   : > { %p1251_p7 = scmp.ge.s32.totalorder %s1672_s27, 1  ;;  %p240_p8 = scmp.lt.s32.totalorder %s1672_s27, 3 }
   0xc   : > { %p241_p9 = pnand %p1251_p7, %p240_p8 }
   0xd   : > { %v1537_v0 = vld [vmem:[%s2084_s1 + $0x40] sm:$0xff] (!%p241_p9)   ;;  %v1674_v2 = vmov (!%p241_p9), 0.0   ;;  %v1540_v4 = vld [vmem:[%s2084_s1 + $0x48] sm:$0xff] (!%p241_p9)   ;;  %vm1675_vm0 = vmmov (!%p241_p9), 0   ;;  %v1543_v7 = vld [vmem:[%s2084_s1 + $0x50] sm:$0xff] (!%p241_p9)   ;;  %p272_p10 = scmp.lt.s32.totalorder (!%p241_p9), %s1740_s28, 1 }
   0xe   : > { %244 = sbr.rel (%p241_p9) target bundleno = 752 (0x2f0), region = 48  ;;  %v1538_v1 = vld [vmem:[%s2084_s1] sm:$0xff] (!%p241_p9)   ;;  %1434 = vmatprep.subr.bf16.mxu1 (!%p241_p9), %v1674_v2  ;;  %278 = vst [vmem:[#allocation2] sm:$0xff] (!%p241_p9), %v1674_v2  ;;  %279 = vst [vmem:[#allocation2 + $0x8] sm:$0xff] (!%p241_p9), %v1674_v2  ;;  %1341 = vmatprep.subr.bf16.mxu0 (!%p241_p9), %v1537_v0  ;;  %v1541_v5 = vld [vmem:[%s2084_s1 + $0x8] sm:$0xff] (!%p241_p9)   ;;  %s269_s13 = sand.u32 (!%p241_p9), 1, %s1664_s25  }
   0xf   : > { %280 = vst [vmem:[#allocation2 + $0x10] sm:$0x3] (!%p241_p9), %v1674_v2  ;;  %281 = vst [vmem:[#allocation3] sm:$0xff] (!%p241_p9), %v1674_v2  ;;  %v1539_v3 = vld [vmem:[%s2084_s1 + $0x80] sm:$0xff] (!%p241_p9)   ;;  %1342 = vmatpush3.bf16.msra.mxu0 (!%p241_p9), %v1538_v1  ;;  %1450 = vmatprep.mubr.msk.bf16.mxu1 (!%p241_p9), %vm1675_vm0, %v1674_v2  ;;  %v1542_v6 = vld [vmem:[%s2084_s1 + $0x88] sm:$0xff] (!%p241_p9)   ;;  %s1336_s19 = sshll.u32 (!%p241_p9), %s1740_s28, 8 }
  0x10   : > { %282 = vst [vmem:[#allocation3 + $0x8] sm:$0xff] (!%p241_p9), %v1674_v2  ;;  %283 = vst [vmem:[#allocation3 + $0x10] sm:$0x3] (!%p241_p9), %v1674_v2  ;;  %1435 = vmatpush3.bf16.msra.mxu1 (!%p241_p9), %v1539_v3  ;;  %1343 = vmatprep.subr.bf16.mxu0 (!%p241_p9), %v1540_v4  ;;  %v1544_v8 = vld [vmem:[%s2084_s1 + $0x10] sm:$0xff] (!%p241_p9)   ;;  %v1546_v10 = vld [vmem:[%s2084_s1 + $0x58] sm:$0xff] (!%p241_p9)   ;;  %s2038_s21 = scalar_lea.hbm (!%p241_p9), %s2090_s7, %s1336_s19  ;;  %s2042_s22 = scalar_lea.sflag (!%p241_p9), [#allocation5], %s269_s13 }
  0x11   : > { %1436 = vmatprep.subr.bf16.mxu1 (!%p241_p9), %v1674_v2  ;;  %v1545_v9 = vld [vmem:[%s2084_s1 + $0x90] sm:$0xff] (!%p241_p9)   ;;  %v1547_v11 = vld [vmem:[%s2084_s1 + $0x18] sm:$0xff] (!%p241_p9)   ;;  %v1549_v13 = vld [vmem:[%s2084_s1 + $0x60] sm:$0xff] (!%p241_p9)  }
  0x12   : > { %v1548_v12 = vld [vmem:[%s2084_s1 + $0x98] sm:$0xff] (!%p241_p9)   ;;  %v1550_v14 = vld [vmem:[%s2084_s1 + $0x20] sm:$0xff] (!%p241_p9)   ;;  %v1552_v16 = vld [vmem:[%s2084_s1 + $0x68] sm:$0xff] (!%p241_p9)  }
  0x13   : > { %1344 = vmatpush3.bf16.msra.mxu0 (!%p241_p9), %v1541_v5  ;;  %v1551_v15 = vld [vmem:[%s2084_s1 + $0xa0] sm:$0xff] (!%p241_p9)   ;;  %v1553_v17 = vld [vmem:[%s2084_s1 + $0x28] sm:$0xff] (!%p241_p9)   ;;  %v1555_v19 = vld [vmem:[%s2084_s1 + $0x70] sm:$0xff] (!%p241_p9)  }
  0x14   : > { %1437 = vmatpush3.bf16.msra.mxu1 (!%p241_p9), %v1542_v6  ;;  %1345 = vmatprep.subr.bf16.mxu0 (!%p241_p9), %v1543_v7  ;;  %v1554_v18 = vld [vmem:[%s2084_s1 + $0xa8] sm:$0xff] (!%p241_p9)   ;;  %v1556_v20 = vld [vmem:[%s2084_s1 + $0x30] sm:$0xff] (!%p241_p9)   ;;  %v1558_v24 = vld [vmem:[%s2084_s1 + $0x78] sm:$0xff] (!%p241_p9)  }
  0x15   : > { %1438 = vmatprep.subr.bf16.mxu1 %v1674_v2  ;;  %s273_s8 = scalar_select %p272_p10, %s1740_s28, 1  ;;  %v1557_v21 = vld [vmem:[%s2084_s1 + $0xb0] sm:$0xff]   ;;  %v1559_v27 = vld [vmem:[%s2084_s1 + $0x38] sm:$0xff]   ;;  %v1562_v29 = vld [vmem:[%s2086_s3 + $0x40] sm:$0xff]  }
  0x16   : > { %v1561_v28 = vld [vmem:[%s2084_s1 + $0xb8] sm:$0xff]   ;;  %v1564_v30 = vld [vmem:[%s2086_s3] sm:$0xff]   ;;  %v1565_v32 = vld [vmem:[%s2086_s3 + $0x48] sm:$0xff]   ;;  %s1676_s28 = smov [#allocation4]  }
  0x17   : > { %1346 = vmatpush3.bf16.msra.mxu0 %v1544_v8  ;;  %s1335_s18 = sshll.u32 %s273_s8, 3  ;;  %v1563_v31 = vld [vmem:[%s2086_s3 + $0x80] sm:$0xff]   ;;  %v1567_v39 = vld [vmem:[%s2086_s3 + $0x8] sm:$0xff]   ;;  %v1568_v41 = vld [vmem:[%s2086_s3 + $0x50] sm:$0xff]   ;;  %s1614_s29 = sshll.u32 %s1676_s28, 4  ;;  %s1615_s29 = int_to_ptr.vmem [resolvable:$false] %s1614_s29 }
  0x18   : > { %1439 = vmatpush3.bf16.msra.mxu1 %v1545_v9  ;;  %1347 = vmatprep.subr.bf16.mxu0 %v1546_v10  ;;  %s276_s14 = scalar_lea.vmem %s2083_s0, %s1335_s18  ;;  %v1566_v40 = vld [vmem:[%s2086_s3 + $0x88] sm:$0xff]   ;;  %v1569_v42 = vld [vmem:[%s2086_s3 + $0x90] sm:$0xff]   ;;  %v1571_v44 = vld [vmem:[%s2086_s3 + $0x58] sm:$0xff]   ;;  %s1616_s9 = scalar_lea.vmem %s1615_s29, 512 }
  0x19   : > { %1440 = vmatprep.subr.bf16.mxu1 %v1674_v2  ;;  %v1338_v22 = vld [vmem:[%s276_s14] sm:$0xff]   ;;  %v1570_v43 = vld [vmem:[%s2086_s3 + $0x10] sm:$0xff]   ;;  %v1572_v45 = vld [vmem:[%s2086_s3 + $0x98] sm:$0xff]  }
  0x1a   : > { %v1560_v23 = vld [vmem:[%s276_s14] sm:$0xff]  ;;  %v1339_v25 = vunpack.c.l.bf16 %v1338_v22  ;;  %v1340_v26 = vunpack.c.h.bf16 %v1338_v22  ;;  %v1573_v46 = vld [vmem:[%s2086_s3 + $0x18] sm:$0xff]   ;;  %v1577_v50 = vld [vmem:[%s2086_s3 + $0x68] sm:$0xff]   ;;  %s1252_s14 = sshll.u32 %s269_s13, 4 }
  0x1b   : > { %1348 = vmatpush3.bf16.msra.mxu0 %v1547_v11  ;;  %530 = vmatprep.mubr.bf16.mxu0 %v1560_v23  ;;  %v1574_v47 = vld [vmem:[%s2086_s3 + $0x60] sm:$0xff]   ;;  %v1578_v51 = vld [vmem:[%s2086_s3 + $0xa8] sm:$0xff]   ;;  %v1580_v53 = vld [vmem:[%s2086_s3 + $0x70] sm:$0xff]   ;;  %s271_s16 = scalar_lea.vmem [#allocation4], %s1252_s14 }
  0x1c   : > { %1441 = vmatpush3.bf16.msra.mxu1 %v1548_v12  ;;  %1349 = vmatprep.subr.bf16.mxu0 %v1549_v13  ;;  %288 = vst [vmem:[#allocation2 + $0x1] sm:$0xff] %v1339_v25  ;;  %289 = vst [vmem:[#allocation2 + $0x9] sm:$0xff] %v1340_v26  ;;  %v1575_v48 = vld [vmem:[%s2086_s3 + $0xa0] sm:$0xff]   ;;  %v1579_v52 = vld [vmem:[%s2086_s3 + $0x28] sm:$0xff]   ;;  %s1186_s17 = sshll.u32 %s271_s16, 4  ;;  %s2040_s17 = int_to_ptr.vmem [resolvable:$true] %s1186_s17 }
  0x1d   : > { %1442 = vmatprep.subr.bf16.mxu1 %v1674_v2  ;;  %v1576_v49 = vld [vmem:[%s2086_s3 + $0x20] sm:$0xff]   ;;  %v1581_v54 = vld [vmem:[%s2086_s3 + $0xb0] sm:$0xff]   ;;  %v1583_v56 = vld [vmem:[%s2086_s3 + $0x78] sm:$0xff]   ;;  %s1610_s23 = scalar_lea.vmem %s2040_s17, 256  ;;  %p1617_p0 = scmp.lt.s32.totalorder %s2040_s17, %s1615_s29 }
  0x1e   : > { %v1582_v55 = vld [vmem:[%s2086_s3 + $0x30] sm:$0xff]   ;;  %v1584_v57 = vld [vmem:[%s2086_s3 + $0xb8] sm:$0xff]   ;;  %v1586_v59 = vld [vmem:[%s2088_s5 + $0x40] sm:$0xff]   ;;  %p1611_p11 = scmp.ne.s32.totalorder %s2040_s17, %s1610_s23  ;;  %p1618_p1 = scmp.lt.s32.totalorder %s1616_s9, %s1610_s23 }
  0x1f   : > { %1350 = vmatpush3.bf16.msra.mxu0 %v1550_v14  ;;  %v1585_v58 = vld [vmem:[%s2086_s3 + $0x38] sm:$0xff]   ;;  %v1255_v62 = vld [vmem:[%s2085_s2] ss:$0 sm:$0xff]  ;;  %v1589_v23 = vld [vmem:[%s2088_s5 + $0x48] sm:$0xff]  }
  0x20   : > { %1443 = vmatpush3.bf16.msra.mxu1 %v1551_v15  ;;  %1351 = vmatprep.subr.bf16.mxu0 %v1552_v16  ;;  %v1587_v16 = vld [vmem:[%s2088_s5 + $0x80] sm:$0xff]   ;;  %v1591_v25 = vld [vmem:[%s2088_s5 + $0x8] sm:$0xff]   ;;  %v1592_v26 = vld [vmem:[%s2088_s5 + $0x50] sm:$0xff]   ;;  %p1612_p12 = pnand %p1611_p11, %p1757_p5  ;;  %p1619_p2 = por %p1618_p1, %p1617_p0 }
  0x21   : > { %1444 = vmatprep.subr.bf16.mxu1 %v1674_v2 }
  0x22   : > { %p1613_p13 = pneg %p1612_p12 }
  0x23   : > { %1352 = vmatpush3.bf16.msra.mxu0 %v1553_v17  ;;  %v290_v33 = vld [vmem:[#allocation2] sm:$0xff]  ;;  %v291_v34 = vld [vmem:[#allocation2 + $0x8] sm:$0xff] }
  0x24   : > { %1445 = vmatpush3.bf16.msra.mxu1 %v1554_v18  ;;  %1353 = vmatprep.subr.bf16.mxu0 %v1555_v19  ;;  %v294_v35 = vld [vmem:[#allocation2 + $0x2] sm:$0xff]  ;;  %v296_v36 = vpack.c.bf16 %v291_v34, %v290_v33  ;;  %v295_v37 = vld [vmem:[#allocation2 + $0xa] sm:$0xff]  ;;  %p1620_p3 = pnand %p1619_p2, %p1613_p13 }
  0x25   : > { %1446 = vmatprep.subr.bf16.mxu1 %v1674_v2  ;;  %v298_v38 = vpack.c.bf16 %v295_v37, %v294_v35  ;;  %v1588_v17 = vld [vmem:[%s2088_s5] sm:$0xff]   ;;  %v1601_v35 = vld [vmem:[%s2088_s5 + $0x68] sm:$0xff]  }
  0x26   : > { %v1599_v33 = vld [vmem:[%s2088_s5 + $0xa0] sm:$0xff]   ;;  %v1603_v37 = vld [vmem:[%s2088_s5 + $0x28] sm:$0xff]  }
  0x27   : > { %1354 = vmatpush3.bf16.msra.mxu0 %v1556_v20  ;;  %v1600_v34 = vld [vmem:[%s2088_s5 + $0x20] sm:$0xff]  }
  0x28   : > { %1447 = vmatpush3.bf16.msra.mxu1 %v1557_v21  ;;  %1355 = vmatprep.subr.bf16.mxu0 %v1558_v24  ;;  %v1590_v24 = vld [vmem:[%s2088_s5 + $0x88] sm:$0xff]  }
  0x29   : > { %1448 = vmatprep.subr.bf16.mxu1 %v1674_v2 }
  0x2b   : > { %1356 = vmatpush3.bf16.msra.mxu0 %v1559_v27  ;;  %v1593_v27 = vld [vmem:[%s2088_s5 + $0x90] sm:$0xff]  }
  0x2c   : > { %1449 = vmatpush3.bf16.msra.mxu1 %v1561_v28  ;;  %1372 = vmatprep.subr.bf16.mxu0 %v1562_v29  ;;  %v1594_v28 = vld [vmem:[%s2088_s5 + $0x10] sm:$0xff]   ;;  %v1595_v29 = vld [vmem:[%s2088_s5 + $0x58] sm:$0xff]  }
  0x2d   : > { %1454 = vmatprep.subr.bf16.mxu1 %v1674_v2 }
  0x2e   : > { %531 = vmatmul.mubr.bf16.vlgmr.msra.gmra.mrb[0].mxu0 %v296_v36  ;;  %v1602_v36 = vld [vmem:[%s2088_s5 + $0xa8] sm:$0xff]  }
  0x2f   : > { %1451 = vmatmul.mubr.bf16.vlgmr.msra.gmra.mrb[0].mxu1 %v298_v38  ;;  %1373 = vmatpush3.bf16.msra.mxu0 %v1564_v30  ;;  %v1596_v30 = vld [vmem:[%s2088_s5 + $0x98] sm:$0xff]   ;;  %v1604_v38 = vld [vmem:[%s2088_s5 + $0x70] sm:$0xff]  }
  0x30   : > { %1455 = vmatpush3.bf16.msra.mxu1 %v1563_v31  ;;  %1374 = vmatprep.subr.bf16.mxu0 %v1565_v32  ;;  %v1597_v31 = vld [vmem:[%s2088_s5 + $0x18] sm:$0xff]   ;;  %v1598_v32 = vld [vmem:[%s2088_s5 + $0x60] sm:$0xff]  }
  0x31   : > { %1456 = vmatprep.subr.bf16.mxu1 %v1674_v2  ;;  %1470 = vmatprep.mubr.msk.bf16.mxu1 %vm1675_vm0, %v1674_v2 }
  0x33   : > { %1375 = vmatpush3.bf16.msra.mxu0 %v1567_v39  ;;  %v1605_v39 = vld [vmem:[%s2088_s5 + $0xb0] sm:$0xff]  }
  0x34   : > { %1457 = vmatpush3.bf16.msra.mxu1 %v1566_v40  ;;  %1376 = vmatprep.subr.bf16.mxu0 %v1568_v41  ;;  %v1606_v40 = vld [vmem:[%s2088_s5 + $0x30] sm:$0xff]   ;;  %v1607_v41 = vld [vmem:[%s2088_s5 + $0x78] sm:$0xff]  }
  0x35   : > { %1458 = vmatprep.subr.bf16.mxu1 %v1674_v2 }
  0x37   : > { %1377 = vmatpush3.bf16.msra.mxu0 %v1570_v43  ;;  %v1609_v43 = vld [vmem:[%s2088_s5 + $0x38] sm:$0xff]  }
  0x38   : > { %1459 = vmatpush3.bf16.msra.mxu1 %v1569_v42  ;;  %1378 = vmatprep.subr.bf16.mxu0 %v1571_v44  ;;  %v1608_v42 = vld [vmem:[%s2088_s5 + $0xb8] sm:$0xff]  }
  0x39   : > { %1460 = vmatprep.subr.bf16.mxu1 %v1674_v2 }
  0x3b   : > { %1379 = vmatpush3.bf16.msra.mxu0 %v1573_v46 }
  0x3c   : > { %1461 = vmatpush3.bf16.msra.mxu1 %v1572_v45  ;;  %1380 = vmatprep.subr.bf16.mxu0 %v1574_v47  ;;  %v1280_v47 = vld [vmem:[%s2087_s4] ss:$0 sm:$0xff] }
  0x3d   : > { %1462 = vmatprep.subr.bf16.mxu1 %v1674_v2 }
  0x3f   : > { %1381 = vmatpush3.bf16.msra.mxu0 %v1576_v49 }
  0x40   : > { %1463 = vmatpush3.bf16.msra.mxu1 %v1575_v48  ;;  %1382 = vmatprep.subr.bf16.mxu0 %v1577_v50 }
  0x41   : > { %1464 = vmatprep.subr.bf16.mxu1 %v1674_v2 }
  0x43   : > { %1383 = vmatpush3.bf16.msra.mxu0 %v1579_v52 }
  0x44   : > { %1465 = vmatpush3.bf16.msra.mxu1 %v1578_v51  ;;  %1384 = vmatprep.subr.bf16.mxu0 %v1580_v53 }
  0x45   : > { %1466 = vmatprep.subr.bf16.mxu1 %v1674_v2 }
  0x47   : > { %1385 = vmatpush3.bf16.msra.mxu0 %v1582_v55 }
  0x48   : > { %1467 = vmatpush3.bf16.msra.mxu1 %v1581_v54  ;;  %1386 = vmatprep.subr.bf16.mxu0 %v1583_v56 }
  0x49   : > { %1468 = vmatprep.subr.bf16.mxu1 %v1674_v2 }
  0x4b   : > { %1387 = vmatpush3.bf16.msra.mxu0 %v1585_v58 }
  0x4c   : > { %1469 = vmatpush3.bf16.msra.mxu1 %v1584_v57  ;;  %1403 = vmatprep.subr.bf16.mxu0 %v1586_v59 }
  0x4d   : > { %1474 = vmatprep.subr.bf16.mxu1 %v1674_v2 }
 0x101   : > { %v1357_v60 = vpop.f32.mrb[0].mxu0 }
 0x102   : > { %v1358_v61 = vpop.f32.mrb[1].mxu0  ;;  %v573_v63 = vpop.f32.mrb[0].mxu1 }
 0x103   : > { %v1359_v0 = vadd.f32 %v1358_v61, %v1357_v60  ;;  %v1360_v1 = vpop.f32.mrb[2].mxu0  ;;  %v1452_v3 = vpop.f32.mrb[1].mxu1 }
 0x104   : > { %v1361_v4 = vpop.f32.mrb[3].mxu0  ;;  %v576_v5 = vpop.f32.mrb[2].mxu1 }
 0x105   : > { %v533_v6 = vadd.f32 %v1359_v0, %v1255_v62  ;;  %v1362_v7 = vadd.f32 %v1361_v4, %v1360_v1  ;;  %v1453_v8 = vpop.f32.mrb[3].mxu1 }
 0x107   : > { %v574_v9 = vadd.f32 %v573_v63, %v533_v6  ;;  %v536_v10 = vadd.f32 %v1362_v7, %v1255_v62  ;;  %v1305_v7 = vld [vmem:[%s2089_s6] ss:$0 sm:$0xff] }
 0x109   : > { %v580_v11 = vmax.f32 %v574_v9, 0.0  ;;  %v577_v12 = vadd.f32 %v576_v5, %v536_v10 }
 0x10b   : > { %582 = vst [vmem:[#allocation3 + $0x1] sm:$0xff] %v580_v11  ;;  %v581_v13 = vmax.f32 %v577_v12, 0.0 }
 0x10d   : > { %583 = vst [vmem:[#allocation3 + $0x9] sm:$0xff] %v581_v13  ;;  %v591_v14 = vpack.c.bf16 %v581_v13, %v580_v11 }
 0x10f   : > { %824 = vmatprep.mubr.bf16.mxu0 %v591_v14 }
 0x112   : > { %v584_v15 = vld [vmem:[#allocation3] sm:$0xff] }
 0x114   : > { %v588_v18 = vld [vmem:[#allocation3 + $0x2] sm:$0xff]  ;;  %v589_v19 = vld [vmem:[#allocation3 + $0xa] sm:$0xff] }
 0x115   : > { %v585_v20 = vld [vmem:[#allocation3 + $0x8] sm:$0xff]  ;;  %v592_v21 = vpack.c.bf16 %v589_v19, %v588_v18 }
 0x116   : > { %v590_v22 = vpack.c.bf16 %v585_v20, %v584_v15 }
 0x117   : > { %1471 = vmatmul.mubr.bf16.vlgmr.msra.gmra.mrb[4].mxu1 %v592_v21 }
 0x118   : > { %825 = vmatmul.mubr.bf16.vlgmr.msra.gmra.mrb[4].mxu0 %v590_v22  ;;  %1475 = vmatpush3.bf16.msra.mxu1 %v1587_v16 }
 0x119   : > { %1404 = vmatpush3.bf16.msra.mxu0 %v1588_v17  ;;  %1476 = vmatprep.subr.bf16.mxu1 %v1674_v2 }
 0x11a   : > { %1405 = vmatprep.subr.bf16.mxu0 %v1589_v23  ;;  %1490 = vmatprep.mubr.msk.bf16.mxu1 %vm1675_vm0, %v1674_v2 }
 0x11c   : > { %1477 = vmatpush3.bf16.msra.mxu1 %v1590_v24 }
 0x11d   : > { %1406 = vmatpush3.bf16.msra.mxu0 %v1591_v25  ;;  %1478 = vmatprep.subr.bf16.mxu1 %v1674_v2 }
 0x11e   : > { %1407 = vmatprep.subr.bf16.mxu0 %v1592_v26 }
 0x120   : > { %1479 = vmatpush3.bf16.msra.mxu1 %v1593_v27 }
 0x121   : > { %1408 = vmatpush3.bf16.msra.mxu0 %v1594_v28  ;;  %1480 = vmatprep.subr.bf16.mxu1 %v1674_v2 }
 0x122   : > { %1409 = vmatprep.subr.bf16.mxu0 %v1595_v29 }
 0x124   : > { %1481 = vmatpush3.bf16.msra.mxu1 %v1596_v30 }
 0x125   : > { %1410 = vmatpush3.bf16.msra.mxu0 %v1597_v31  ;;  %1482 = vmatprep.subr.bf16.mxu1 %v1674_v2 }
 0x126   : > { %1411 = vmatprep.subr.bf16.mxu0 %v1598_v32 }
 0x128   : > { %1483 = vmatpush3.bf16.msra.mxu1 %v1599_v33 }
 0x129   : > { %1412 = vmatpush3.bf16.msra.mxu0 %v1600_v34  ;;  %1484 = vmatprep.subr.bf16.mxu1 %v1674_v2 }
 0x12a   : > { %1413 = vmatprep.subr.bf16.mxu0 %v1601_v35 }
 0x12c   : > { %1485 = vmatpush3.bf16.msra.mxu1 %v1602_v36 }
 0x12d   : > { %1414 = vmatpush3.bf16.msra.mxu0 %v1603_v37  ;;  %1486 = vmatprep.subr.bf16.mxu1 %v1674_v2 }
 0x12e   : > { %1415 = vmatprep.subr.bf16.mxu0 %v1604_v38 }
 0x130   : > { %1487 = vmatpush3.bf16.msra.mxu1 %v1605_v39 }
 0x131   : > { %1416 = vmatpush3.bf16.msra.mxu0 %v1606_v40  ;;  %1488 = vmatprep.subr.bf16.mxu1 %v1674_v2 }
 0x132   : > { %1417 = vmatprep.subr.bf16.mxu0 %v1607_v41 }
 0x134   : > { %1489 = vmatpush3.bf16.msra.mxu1 %v1608_v42 }
 0x135   : > { %1418 = vmatpush3.bf16.msra.mxu0 %v1609_v43 }
 0x1ea   : > { %v867_v44 = vpop.f32.mrb[4].mxu1 }
 0x1eb   : > { %v1388_v45 = vpop.f32.mrb[4].mxu0  ;;  %v1472_v46 = vpop.f32.mrb[5].mxu1 }
 0x1ec   : > { %v1389_v48 = vpop.f32.mrb[5].mxu0  ;;  %v870_v50 = vpop.f32.mrb[6].mxu1 }
 0x1ed   : > { %v1390_v49 = vadd.f32 %v1389_v48, %v1388_v45  ;;  %v1391_v51 = vpop.f32.mrb[6].mxu0  ;;  %v1473_v52 = vpop.f32.mrb[7].mxu1 }
 0x1ee   : > { %v1392_v53 = vpop.f32.mrb[7].mxu0 }
 0x1ef   : > { %v827_v54 = vadd.f32 %v1390_v49, %v1280_v47  ;;  %v1393_v55 = vadd.f32 %v1392_v53, %v1391_v51 }
 0x1f1   : > { %v868_v56 = vadd.f32 %v867_v44, %v827_v54  ;;  %v830_v2 = vadd.f32 %v1393_v55, %v1280_v47 }
 0x1f3   : > { %v874_v57 = vmax.f32 %v868_v56, 0.0  ;;  %v871_v58 = vadd.f32 %v870_v50, %v830_v2 }
 0x1f5   : > { %876 = vst [vmem:[#allocation2 + $0x1] sm:$0xff] %v874_v57  ;;  %v875_v59 = vmax.f32 %v871_v58, 0.0 }
 0x1f7   : > { %877 = vst [vmem:[#allocation2 + $0x9] sm:$0xff] %v875_v59  ;;  %v885_v60 = vpack.c.bf16 %v875_v59, %v874_v57 }
 0x1f9   : > { %1118 = vmatprep.mubr.bf16.mxu0 %v885_v60 }
 0x1fc   : > { %v878_v61 = vld [vmem:[#allocation2] sm:$0xff] }
 0x1fe   : > { %v882_v62 = vld [vmem:[#allocation2 + $0x2] sm:$0xff]  ;;  %v883_v63 = vld [vmem:[#allocation2 + $0xa] sm:$0xff] }
 0x1ff   : > { %v879_v0 = vld [vmem:[#allocation2 + $0x8] sm:$0xff]  ;;  %v886_v1 = vpack.c.bf16 %v883_v63, %v882_v62 }
 0x200   : > { %v884_v3 = vpack.c.bf16 %v879_v0, %v878_v61 }
 0x201   : > { %1491 = vmatmul.mubr.bf16.vlgmr.msra.gmra.mrb[8].mxu1 %v886_v1 }
 0x202   : > { %1119 = vmatmul.mubr.bf16.vlgmr.msra.gmra.mrb[8].mxu0 %v884_v3 }
 0x2d4   : > { %v1161_v4 = vpop.f32.mrb[8].mxu1 }
 0x2d5   : > { %v1419_v5 = vpop.f32.mrb[8].mxu0  ;;  %v1492_v6 = vpop.f32.mrb[9].mxu1 }
 0x2d6   : > { %v1420_v8 = vpop.f32.mrb[9].mxu0  ;;  %v1164_v10 = vpop.f32.mrb[10].mxu1 }
 0x2d7   : > { %v1421_v9 = vadd.f32 %v1420_v8, %v1419_v5  ;;  %v1422_v11 = vpop.f32.mrb[10].mxu0  ;;  %v1493_v12 = vpop.f32.mrb[11].mxu1 }
 0x2d8   : > { %v1423_v13 = vpop.f32.mrb[11].mxu0 }
 0x2d9   : > { %v1121_v14 = vadd.f32 %v1421_v9, %v1305_v7  ;;  %v1424_v15 = vadd.f32 %v1423_v13, %v1422_v11 }
 0x2db   : > { %v1162_v16 = vadd.f32 %v1161_v4, %v1121_v14  ;;  %v1124_v17 = vadd.f32 %v1424_v15, %v1305_v7 }
 0x2dd   : > { %v1168_v18 = vmax.f32 %v1162_v16, 0.0  ;;  %v1165_v19 = vadd.f32 %v1164_v10, %v1124_v17 }
 0x2df   : > { %1170 = vst [vmem:[%s271_s16] sm:$0xff] %v1168_v18  ;;  %v1169_v20 = vmax.f32 %v1165_v19, 0.0 }
 0x2e1   : > { %1171 = vst [vmem:[%s271_s16 + $0x8] sm:$0xff] %v1169_v20 }
 0x2e2   : > { %1623 = shalt.err (!%p1620_p3)
}
 0x2e3   : > { %s1624_s13 = scalar_lea.hbm %s2038_s21, 256  ;;  %s1628_s15 = scalar_lea.hbm %s2090_s7, 512 }
 0x2e4   : > { %p1625_p4 = scmp.ne.s32.totalorder %s2038_s21, %s1624_s13  ;;  %p1629_p9 = scmp.lt.u32.totalorder %s2038_s21, %s2090_s7 }
 0x2e5   : > { %p1630_p10 = scmp.lt.u32.totalorder %s1628_s15, %s1624_s13  ;;  %p1632_p12 = scmp.lt.u32.totalorder %s1624_s13, %s2038_s21 }
 0x2e6   : > { %p1626_p7 = pnand %p1625_p4, %p1757_p5 }
 0x2e7   : > { %p1631_p11 = por %p1630_p10, %p1629_p9 }
 0x2e8   : > { %p1627_p8 = pneg %p1626_p7 }
 0x2e9   : > { %p1633_p13 = por %p1632_p12, %p1631_p11 }
 0x2eb   : > { %p1634_p0 = pnand %p1633_p13, %p1627_p8 }
 0x2ed   : > { %1637 = shalt.err (!%p1634_p0)
}
 0x2ee   : > { %s1677_s20 = smov 128   ;;  %s1678_s18 = smov 8  }
 0x2ef   : > { %1494 = dma.vmem_to_hbm [thread:$0]  (%p1757_p5), %s2040_s17, 256, %s2038_s21, %s2042_s22, %s1677_s20, %s1677_s20, %s1678_s18  }
 0x2f0 PF: > { %p1500_p1 = scmp.ge.s32.totalorder %s1672_s27, 2  ;;  %s1201_s23 = sand.u32 1, %s1660_s24  }
 0x2f1   : > { %s1202_s28 = scalar_lea.sflag [#allocation5], %s1201_s23 }
 0x2f2   : > { %p1497_p2 = pnand %p1500_p1, %p1761_p6 }
 0x2f4   : > { %1655 = dma.done.wait (!%p1497_p2), %s1202_s28, 256  }
 0x2f5   : > { %1657 = vsyncadd (!%p1497_p2), %s1202_s28, 4294967040  ;;  %p17_p3 = scmp.ge.s32.totalorder %s1744_s30, 4   ;;  %s2093_s24 = smov %s1664_s25 }
 0x2f6   : > { %s2094_s25 = smov %s1668_s26  ;;  %s2095_s26 = smov %s1755_s10 }
 0x2f7   : > { %s2096_s27 = smov %s1744_s30  ;;  %19 = sbr.rel (!%p17_p3) target bundleno = 3 (0x3), region = 83 }
 0x2fe   :  { %1207 = vsyncpa [#allocation5], 1 }
 0x2ff   :  { %1209 = vsyncpa [#allocation5 + $0x1], 1 }

</bundles_post_ra>
